<compile_context>
chip_gen: v7x
topology: tpu7x:2x2x1
jax: 0.10.0
libtpu: 0.0.40
codegen_flags: <defaults>
</compile_context>

<pallas_src>
import functools

import jax
import jax.numpy as jnp
from jax.experimental import pallas as pl
from jax.experimental.pallas import tpu as pltpu


LANES = 128
SUBLANES = 8
MAX_BLOCK_ROWS = 2048                  # (2048, 128) f32 tile = 1 MiB per operand
VMEM_TILE_BUDGET = 12 * 1024 * 1024    # input tiles, double-buffered


def _ceil_to(x, m):
    return -(-x // m) * m


def _mask_bce_kernel(*refs, num_preds, rows, block_rows, steps):
    """Fused partial-sum reduction.

    acc_ref planes / out_ref columns (f32, 2 + 2*num_preds entries):
      [0]          sum(valid mask)                        (= n)
      [1]          sum(gt * mask)                         (= points_have_edge_sum)
      [2 + k]      sum(gt * mask * -log(sigmoid(p_k)))    (A_k)
      [2 + P + k]  sum((1-gt) * mask * -log(1-sig(p_k)))  (B_k)
    """
    depth_ref = refs[0]
    gt_ref = refs[1]
    pred_refs = refs[2:2 + num_preds]
    out_ref = refs[2 + num_preds]
    acc_ref = refs[3 + num_preds]
    n_acc = 2 + 2 * num_preds

    chunk = pl.program_id(0)
    step = pl.program_id(1)

    @pl.when(step == 0)
    def _init():
        acc_ref[...] = jnp.zeros_like(acc_ref)

    # The last block may extend past the real data (Pallas pads it with
    # unspecified values) — mask by global row index.  `rows` is static.
    row0 = (chunk * steps + step) * block_rows
    row_ids = row0 + jax.lax.broadcasted_iota(jnp.int32, (block_rows, LANES), 0)

    d = depth_ref[...]
    # ~isnan(depth): NaN != NaN, so (d == d) is the valid-depth mask.
    valid = jnp.logical_and(row_ids < rows, d == d)
    m = valid.astype(jnp.float32)
    # gt * mask; also zeroes any garbage values in the padded tail.
    gt = jnp.where(valid, gt_ref[...].astype(jnp.float32), 0.0)

    def fold(x):
        # (block_rows, 128) -> (8, 128) using only vreg-wise adds (no cross-lane
        # reduce, no scalar round-trip in the hot loop).
        if block_rows == SUBLANES:
            return x
        return jnp.sum(x.reshape(block_rows // SUBLANES, SUBLANES, LANES), axis=0)

    acc_ref[0] = acc_ref[0] + fold(m)
    acc_ref[1] = acc_ref[1] + fold(gt)

    for k in range(num_preds):
        p = pred_refs[k][...].astype(jnp.float32)
        # reference: pred[pred == 0] = -1 ; masked / padded points are also forced
        # to a harmless finite value so 0 * inf cannot poison the sums.
        p = jnp.where(jnp.logical_and(valid, p != 0.0), p, -1.0)
        # stable softplus:
        #   softplus(p)  = max(p, 0) + log(1 + exp(-|p|)) = -log(1 - sigmoid(p))
        #   softplus(-p) = softplus(p) - p                = -log(sigmoid(p))
        t = jnp.log(1.0 + jnp.exp(-jnp.abs(p)))
        sp_pos = jnp.maximum(p, 0.0) + t
        sp_neg = sp_pos - p
        acc_ref[2 + k] = acc_ref[2 + k] + fold(gt * sp_neg)
        acc_ref[2 + num_preds + k] = acc_ref[2 + num_preds + k] + fold((m - gt) * sp_pos)

    @pl.when(step == pl.num_programs(1) - 1)
    def _finalize():
        for idx in range(n_acc):
            out_ref[0, idx] = jnp.sum(acc_ref[idx])


@functools.partial(jax.jit, static_argnames=("loss_weight",))
def mask_loss_ce_all_binary(predicted_mask, gt_mask, depth_image, loss_weight=1.0):
    """Pallas implementation of MaskLoss_CE_All_binary.forward."""
    num_preds = len(predicted_mask)

    depth = depth_image.reshape(-1)                       # free bitcast reshape
    gt = gt_mask.reshape(-1)
    if not jnp.issubdtype(gt.dtype, jnp.floating):
        gt = gt.astype(jnp.float32)
    preds = [p.reshape(-1) for p in predicted_mask]
    n_elems = depth.shape[0]

    # Lane-alignment fallback: only pays a copy when numel % 128 != 0.
    pad = (-n_elems) % LANES
    if pad:
        depth = jnp.pad(depth, (0, pad), constant_values=float("nan"))
        gt = jnp.pad(gt, (0, pad))
        preds = [jnp.pad(p, (0, pad)) for p in preds]

    rows = (n_elems + pad) // LANES

    # Pick the biggest block that fits the double-buffered VMEM budget.
    bytes_per_row = sum(x.dtype.itemsize for x in [depth, gt] + preds) * LANES
    fit_rows = max(SUBLANES, VMEM_TILE_BUDGET // (2 * bytes_per_row))
    block_rows = min(MAX_BLOCK_ROWS, (fit_rows // SUBLANES) * SUBLANES)
    block_rows = max(SUBLANES, min(block_rows, _ceil_to(rows, SUBLANES)))

    row_blocks = -(-rows // block_rows)
    # 2-way outer split only when there is plenty of work (v7x megacore can shard
    # it across TensorCores; on single-TC chips it is two back-to-back reductions).
    if row_blocks >= 8 and row_blocks % 2 == 0:
        num_chunks = 2
    else:
        num_chunks = 1
    steps = row_blocks // num_chunks

    depth_2d = depth.reshape(rows, LANES)
    gt_2d = gt.reshape(rows, LANES)
    preds_2d = [p.reshape(rows, LANES) for p in preds]

    n_out = 2 + 2 * num_preds

    def idx_map(c, s):
        return (c * steps + s, 0)

    data_specs = [pl.BlockSpec((block_rows, LANES), idx_map)
                  for _ in range(2 + num_preds)]

    total_bytes = sum(int(x.size) * x.dtype.itemsize
                      for x in [depth_2d, gt_2d] + preds_2d)
    cost = pl.CostEstimate(
        flops=int(n_elems) * (6 + 10 * num_preds),
        transcendentals=2 * num_preds * int(n_elems),
        bytes_accessed=total_bytes,
    )

    partials = pl.pallas_call(
        functools.partial(_mask_bce_kernel, num_preds=num_preds, rows=rows,
                          block_rows=block_rows, steps=steps),
        out_shape=jax.ShapeDtypeStruct((num_chunks, n_out), jnp.float32),
        grid=(num_chunks, steps),
        in_specs=data_specs,
        out_specs=pl.BlockSpec((1, n_out), lambda c, s: (c, 0),
                               memory_space=pltpu.MemorySpace.SMEM),
        scratch_shapes=[pltpu.VMEM((n_out, SUBLANES, LANES), jnp.float32)],
        compiler_params=pltpu.CompilerParams(
            dimension_semantics=("parallel", "arbitrary"),
            vmem_limit_bytes=32 * 1024 * 1024),
        cost_estimate=cost,
    )(depth_2d, gt_2d, *preds_2d)

    sums = jnp.sum(partials, axis=0)            # combine per-chunk partials
    n = sums[0]
    pos_sum = sums[1]
    a = sums[2:2 + num_preds]                   # gt * -log(sigmoid(p)) sums
    b = sums[2 + num_preds:]                    # (1-gt) * -log(1-sigmoid(p)) sums
    pos_weight = (n - pos_sum) / pos_sum
    loss = jnp.sum(pos_weight * a + b) / n
    return loss_weight * loss


# ---------------------------------------------------------------------------
# Pure-JAX reference (literal transcription of the PyTorch forward) for checking.
# ---------------------------------------------------------------------------
def _reference_loss(predicted_mask, gt_mask, depth_image, loss_weight=1.0):
    mf = (~jnp.isnan(depth_image)).astype(jnp.float32)
    n = jnp.sum(mf)
    gt = gt_mask.astype(jnp.float32)
    pos_sum = jnp.sum(gt * mf)
    pos_weight = (n - pos_sum) / pos_sum
    loss = jnp.float32(0.0)
    for pred in predicted_mask:
        p = jnp.where(pred == 0.0, -1.0, pred.astype(jnp.float32))
        sig = jax.nn.sigmoid(p)
        term = pos_weight * gt * -jnp.log(sig) + (1.0 - gt) * -jnp.log(1.0 - sig)
        loss = loss + jnp.sum(term * mf) / n
    return loss_weight * loss


if __name__ == "__main__":
    key = jax.random.PRNGKey(0)
    B, C, H, W = 2, 1, 16, 16
    NUM_PREDS = 3
    k_depth, k_nan, k_gt, k_pred, k_zero = jax.random.split(key, 5)

    depth_image = jax.random.normal(k_depth, (B, C, H, W), jnp.float32)
    nan_sel = jax.random.uniform(k_nan, (B, C, H, W)) < 0.25
    depth_image = jnp.where(nan_sel, jnp.float32(float("nan")), depth_image)

    gt_mask = (jax.random.uniform(k_gt, (B, C, H, W)) < 0.3).astype(jnp.float32)

    predicted_mask = []
    for i in range(NUM_PREDS):
        kp = jax.random.fold_in(k_pred, i)
        kz = jax.random.fold_in(k_zero, i)
        p = jax.random.normal(kp, (B, C, H, W), jnp.float32)
        # exercise the `pred[pred == 0] = -1` branch
        p = jnp.where(jax.random.uniform(kz, (B, C, H, W)) < 0.05, 0.0, p)
        predicted_mask.append(p)

    loss = mask_loss_ce_all_binary(predicted_mask, gt_mask, depth_image, loss_weight=1.0)
    loss = jax.block_until_ready(loss)

    ref = _reference_loss(predicted_mask, gt_mask, depth_image, loss_weight=1.0)
    if not bool(jnp.allclose(loss, ref, rtol=1e-4, atol=1e-5)):
        raise AssertionError(f"mismatch: pallas={float(loss)} ref={float(ref)}")
    print("KERNEL_OK")
</pallas_src>

<mosaic_0001>
module attributes {stable_mosaic.version = 11 : i64} {
  func.func @_mask_bce_kernel(%arg0: i32, %arg1: i32, %arg2: memref<8x128xf32, #tpu.memory_space<vmem>>, %arg3: memref<8x128xf32, #tpu.memory_space<vmem>>, %arg4: memref<8x128xf32, #tpu.memory_space<vmem>>, %arg5: memref<8x128xf32, #tpu.memory_space<vmem>>, %arg6: memref<8x128xf32, #tpu.memory_space<vmem>>, %arg7: memref<1x8xf32, #tpu.memory_space<smem>>, %arg8: memref<8x8x128xf32, #tpu.memory_space<vmem>>) attributes {dimension_semantics = [#tpu.dimension_semantics<parallel>, #tpu.dimension_semantics<arbitrary>], iteration_bounds = array<i64: 1, 1>, scalar_prefetch = 0 : i64, scratch_operands = 1 : i64, tpu.core_type = #tpu.core_type<tc>, window_params = [{transform_indices = @transform_0, window_bounds = array<i64: 8, 128>}, {transform_indices = @transform_1, window_bounds = array<i64: 8, 128>}, {transform_indices = @transform_2, window_bounds = array<i64: 8, 128>}, {transform_indices = @transform_3, window_bounds = array<i64: 8, 128>}, {transform_indices = @transform_4, window_bounds = array<i64: 8, 128>}, {transform_indices = @transform_5, window_bounds = array<i64: 1, 8>}]} {
    %c0_i32 = arith.constant 0 : i32
    %0 = arith.cmpi eq, %arg1, %c0_i32 : i32
    %1 = arith.extui %0 : i1 to i32
    %c0_i32_0 = arith.constant 0 : i32
    %2 = arith.cmpi ne, %1, %c0_i32_0 : i32
    scf.if %2 {
      %cst_68 = arith.constant 0.000000e+00 : f32
      %130 = vector.broadcast %cst_68 : f32 to vector<8x8x128xf32>
      %c0_69 = arith.constant 0 : index
      %c0_70 = arith.constant 0 : index
      %c0_71 = arith.constant 0 : index
      %131 = vector.load %arg8[%c0_69, %c0_70, %c0_71] : memref<8x8x128xf32, #tpu.memory_space<vmem>>, vector<8x8x128xf32>
      tpu.vector_store %arg8[%c0_69, %c0_70, %c0_71], %130 {strides = array<i32>} : memref<8x8x128xf32, #tpu.memory_space<vmem>>, vector<8x8x128xf32>,
    } else {
    }
    %c1_i32 = arith.constant 1 : i32
    %3 = arith.muli %arg0, %c1_i32 : i32
    %4 = arith.addi %3, %arg1 : i32
    %c8_i32 = arith.constant 8 : i32
    %5 = arith.muli %4, %c8_i32 : i32
    %6 = tpu.iota {dimensions = array<i32: 0>} : vector<8x128xi32>
    %7 = vector.broadcast %5 : i32 to vector<8x128xi32>
    %8 = arith.addi %7, %6 : vector<8x128xi32>
    %c0 = arith.constant 0 : index
    %c0_1 = arith.constant 0 : index
    %9 = vector.load %arg2[%c0, %c0_1] : memref<8x128xf32, #tpu.memory_space<vmem>>, vector<8x128xf32>
    %c4_i32 = arith.constant 4 : i32
    %10 = vector.broadcast %c4_i32 : i32 to vector<8x128xi32>
    %11 = arith.cmpi slt, %8, %10 : vector<8x128xi32>
    %12 = arith.cmpf oeq, %9, %9 : vector<8x128xf32>
    %13 = arith.andi %11, %12 : vector<8x128xi1>
    %14 = arith.extui %13 : vector<8x128xi1> to vector<8x128xi32>
    %15 = arith.sitofp %14 : vector<8x128xi32> to vector<8x128xf32>
    %c0_2 = arith.constant 0 : index
    %c0_3 = arith.constant 0 : index
    %16 = vector.load %arg3[%c0_2, %c0_3] : memref<8x128xf32, #tpu.memory_space<vmem>>, vector<8x128xf32>
    %cst = arith.constant 0.000000e+00 : f32
    %17 = vector.broadcast %cst : f32 to vector<8x128xf32>
    %18 = arith.select %13, %16, %17 : vector<8x128xi1>, vector<8x128xf32>
    %c0_4 = arith.constant 0 : index
    %c0_5 = arith.constant 0 : index
    %c0_6 = arith.constant 0 : index
    %19 = vector.load %arg8[%c0_4, %c0_5, %c0_6] : memref<8x8x128xf32, #tpu.memory_space<vmem>>, vector<1x8x128xf32>
    %20 = vector.shape_cast %19 : vector<1x8x128xf32> to vector<8x128xf32>
    %21 = arith.addf %20, %15 : vector<8x128xf32>
    %c0_7 = arith.constant 0 : index
    %c0_8 = arith.constant 0 : index
    %c0_9 = arith.constant 0 : index
    %22 = vector.load %arg8[%c0_7, %c0_8, %c0_9] : memref<8x8x128xf32, #tpu.memory_space<vmem>>, vector<1x8x128xf32>
    %23 = vector.shape_cast %22 : vector<1x8x128xf32> to vector<8x128xf32>
    %24 = vector.shape_cast %21 : vector<8x128xf32> to vector<1x8x128xf32>
    tpu.vector_store %arg8[%c0_7, %c0_8, %c0_9], %24 {strides = array<i32>} : memref<8x8x128xf32, #tpu.memory_space<vmem>>, vector<1x8x128xf32>,
    %c1 = arith.constant 1 : index
    %c0_10 = arith.constant 0 : index
    %c0_11 = arith.constant 0 : index
    %25 = vector.load %arg8[%c1, %c0_10, %c0_11] : memref<8x8x128xf32, #tpu.memory_space<vmem>>, vector<1x8x128xf32>
    %26 = vector.shape_cast %25 : vector<1x8x128xf32> to vector<8x128xf32>
    %27 = arith.addf %26, %18 : vector<8x128xf32>
    %c1_12 = arith.constant 1 : index
    %c0_13 = arith.constant 0 : index
    %c0_14 = arith.constant 0 : index
    %28 = vector.load %arg8[%c1_12, %c0_13, %c0_14] : memref<8x8x128xf32, #tpu.memory_space<vmem>>, vector<1x8x128xf32>
    %29 = vector.shape_cast %28 : vector<1x8x128xf32> to vector<8x128xf32>
    %30 = vector.shape_cast %27 : vector<8x128xf32> to vector<1x8x128xf32>
    tpu.vector_store %arg8[%c1_12, %c0_13, %c0_14], %30 {strides = array<i32>} : memref<8x8x128xf32, #tpu.memory_space<vmem>>, vector<1x8x128xf32>,
    %c0_15 = arith.constant 0 : index
    %c0_16 = arith.constant 0 : index
    %31 = vector.load %arg4[%c0_15, %c0_16] : memref<8x128xf32, #tpu.memory_space<vmem>>, vector<8x128xf32>
    %cst_17 = arith.constant 0.000000e+00 : f32
    %32 = vector.broadcast %cst_17 : f32 to vector<8x128xf32>
    %33 = arith.cmpf one, %31, %32 : vector<8x128xf32>
    %34 = arith.andi %13, %33 : vector<8x128xi1>
    %cst_18 = arith.constant -1.000000e+00 : f32
    %35 = vector.broadcast %cst_18 : f32 to vector<8x128xf32>
    %36 = arith.select %34, %31, %35 : vector<8x128xi1>, vector<8x128xf32>
    %37 = math.absf %36 : vector<8x128xf32>
    %cst_19 = arith.constant 0.000000e+00 : f32
    %38 = vector.broadcast %cst_19 : f32 to vector<8x128xf32>
    %39 = arith.subf %38, %37 : vector<8x128xf32>
    %40 = math.exp %39 : vector<8x128xf32>
    %cst_20 = arith.constant 1.000000e+00 : f32
    %41 = vector.broadcast %cst_20 : f32 to vector<8x128xf32>
    %42 = arith.addf %41, %40 : vector<8x128xf32>
    %43 = math.log %42 : vector<8x128xf32>
    %cst_21 = arith.constant 0.000000e+00 : f32
    %44 = vector.broadcast %cst_21 : f32 to vector<8x128xf32>
    %45 = arith.maximumf %36, %44 : vector<8x128xf32>
    %46 = arith.addf %45, %43 : vector<8x128xf32>
    %47 = arith.subf %46, %36 : vector<8x128xf32>
    %c2 = arith.constant 2 : index
    %c0_22 = arith.constant 0 : index
    %c0_23 = arith.constant 0 : index
    %48 = vector.load %arg8[%c2, %c0_22, %c0_23] : memref<8x8x128xf32, #tpu.memory_space<vmem>>, vector<1x8x128xf32>
    %49 = vector.shape_cast %48 : vector<1x8x128xf32> to vector<8x128xf32>
    %50 = arith.mulf %18, %47 : vector<8x128xf32>
    %51 = arith.addf %49, %50 : vector<8x128xf32>
    %c2_24 = arith.constant 2 : index
    %c0_25 = arith.constant 0 : index
    %c0_26 = arith.constant 0 : index
    %52 = vector.load %arg8[%c2_24, %c0_25, %c0_26] : memref<8x8x128xf32, #tpu.memory_space<vmem>>, vector<1x8x128xf32>
    %53 = vector.shape_cast %52 : vector<1x8x128xf32> to vector<8x128xf32>
    %54 = vector.shape_cast %51 : vector<8x128xf32> to vector<1x8x128xf32>
    tpu.vector_store %arg8[%c2_24, %c0_25, %c0_26], %54 {strides = array<i32>} : memref<8x8x128xf32, #tpu.memory_space<vmem>>, vector<1x8x128xf32>,
    %c5 = arith.constant 5 : index
    %c0_27 = arith.constant 0 : index
    %c0_28 = arith.constant 0 : index
    %55 = vector.load %arg8[%c5, %c0_27, %c0_28] : memref<8x8x128xf32, #tpu.memory_space<vmem>>, vector<1x8x128xf32>
    %56 = vector.shape_cast %55 : vector<1x8x128xf32> to vector<8x128xf32>
    %57 = arith.subf %15, %18 : vector<8x128xf32>
    %58 = arith.mulf %57, %46 : vector<8x128xf32>
    %59 = arith.addf %56, %58 : vector<8x128xf32>
    %c5_29 = arith.constant 5 : index
    %c0_30 = arith.constant 0 : index
    %c0_31 = arith.constant 0 : index
    %60 = vector.load %arg8[%c5_29, %c0_30, %c0_31] : memref<8x8x128xf32, #tpu.memory_space<vmem>>, vector<1x8x128xf32>
    %61 = vector.shape_cast %60 : vector<1x8x128xf32> to vector<8x128xf32>
    %62 = vector.shape_cast %59 : vector<8x128xf32> to vector<1x8x128xf32>
    tpu.vector_store %arg8[%c5_29, %c0_30, %c0_31], %62 {strides = array<i32>} : memref<8x8x128xf32, #tpu.memory_space<vmem>>, vector<1x8x128xf32>,
    %c0_32 = arith.constant 0 : index
    %c0_33 = arith.constant 0 : index
    %63 = vector.load %arg5[%c0_32, %c0_33] : memref<8x128xf32, #tpu.memory_space<vmem>>, vector<8x128xf32>
    %cst_34 = arith.constant 0.000000e+00 : f32
    %64 = vector.broadcast %cst_34 : f32 to vector<8x128xf32>
    %65 = arith.cmpf one, %63, %64 : vector<8x128xf32>
    %66 = arith.andi %13, %65 : vector<8x128xi1>
    %cst_35 = arith.constant -1.000000e+00 : f32
    %67 = vector.broadcast %cst_35 : f32 to vector<8x128xf32>
    %68 = arith.select %66, %63, %67 : vector<8x128xi1>, vector<8x128xf32>
    %69 = math.absf %68 : vector<8x128xf32>
    %cst_36 = arith.constant 0.000000e+00 : f32
    %70 = vector.broadcast %cst_36 : f32 to vector<8x128xf32>
    %71 = arith.subf %70, %69 : vector<8x128xf32>
    %72 = math.exp %71 : vector<8x128xf32>
    %cst_37 = arith.constant 1.000000e+00 : f32
    %73 = vector.broadcast %cst_37 : f32 to vector<8x128xf32>
    %74 = arith.addf %73, %72 : vector<8x128xf32>
    %75 = math.log %74 : vector<8x128xf32>
    %cst_38 = arith.constant 0.000000e+00 : f32
    %76 = vector.broadcast %cst_38 : f32 to vector<8x128xf32>
    %77 = arith.maximumf %68, %76 : vector<8x128xf32>
    %78 = arith.addf %77, %75 : vector<8x128xf32>
    %79 = arith.subf %78, %68 : vector<8x128xf32>
    %c3 = arith.constant 3 : index
    %c0_39 = arith.constant 0 : index
    %c0_40 = arith.constant 0 : index
    %80 = vector.load %arg8[%c3, %c0_39, %c0_40] : memref<8x8x128xf32, #tpu.memory_space<vmem>>, vector<1x8x128xf32>
    %81 = vector.shape_cast %80 : vector<1x8x128xf32> to vector<8x128xf32>
    %82 = arith.mulf %18, %79 : vector<8x128xf32>
    %83 = arith.addf %81, %82 : vector<8x128xf32>
    %c3_41 = arith.constant 3 : index
    %c0_42 = arith.constant 0 : index
    %c0_43 = arith.constant 0 : index
    %84 = vector.load %arg8[%c3_41, %c0_42, %c0_43] : memref<8x8x128xf32, #tpu.memory_space<vmem>>, vector<1x8x128xf32>
    %85 = vector.shape_cast %84 : vector<1x8x128xf32> to vector<8x128xf32>
    %86 = vector.shape_cast %83 : vector<8x128xf32> to vector<1x8x128xf32>
    tpu.vector_store %arg8[%c3_41, %c0_42, %c0_43], %86 {strides = array<i32>} : memref<8x8x128xf32, #tpu.memory_space<vmem>>, vector<1x8x128xf32>,
    %c6 = arith.constant 6 : index
    %c0_44 = arith.constant 0 : index
    %c0_45 = arith.constant 0 : index
    %87 = vector.load %arg8[%c6, %c0_44, %c0_45] : memref<8x8x128xf32, #tpu.memory_space<vmem>>, vector<1x8x128xf32>
    %88 = vector.shape_cast %87 : vector<1x8x128xf32> to vector<8x128xf32>
    %89 = arith.subf %15, %18 : vector<8x128xf32>
    %90 = arith.mulf %89, %78 : vector<8x128xf32>
    %91 = arith.addf %88, %90 : vector<8x128xf32>
    %c6_46 = arith.constant 6 : index
    %c0_47 = arith.constant 0 : index
    %c0_48 = arith.constant 0 : index
    %92 = vector.load %arg8[%c6_46, %c0_47, %c0_48] : memref<8x8x128xf32, #tpu.memory_space<vmem>>, vector<1x8x128xf32>
    %93 = vector.shape_cast %92 : vector<1x8x128xf32> to vector<8x128xf32>
    %94 = vector.shape_cast %91 : vector<8x128xf32> to vector<1x8x128xf32>
    tpu.vector_store %arg8[%c6_46, %c0_47, %c0_48], %94 {strides = array<i32>} : memref<8x8x128xf32, #tpu.memory_space<vmem>>, vector<1x8x128xf32>,
    %c0_49 = arith.constant 0 : index
    %c0_50 = arith.constant 0 : index
    %95 = vector.load %arg6[%c0_49, %c0_50] : memref<8x128xf32, #tpu.memory_space<vmem>>, vector<8x128xf32>
    %cst_51 = arith.constant 0.000000e+00 : f32
    %96 = vector.broadcast %cst_51 : f32 to vector<8x128xf32>
    %97 = arith.cmpf one, %95, %96 : vector<8x128xf32>
    %98 = arith.andi %13, %97 : vector<8x128xi1>
    %cst_52 = arith.constant -1.000000e+00 : f32
    %99 = vector.broadcast %cst_52 : f32 to vector<8x128xf32>
    %100 = arith.select %98, %95, %99 : vector<8x128xi1>, vector<8x128xf32>
    %101 = math.absf %100 : vector<8x128xf32>
    %cst_53 = arith.constant 0.000000e+00 : f32
    %102 = vector.broadcast %cst_53 : f32 to vector<8x128xf32>
    %103 = arith.subf %102, %101 : vector<8x128xf32>
    %104 = math.exp %103 : vector<8x128xf32>
    %cst_54 = arith.constant 1.000000e+00 : f32
    %105 = vector.broadcast %cst_54 : f32 to vector<8x128xf32>
    %106 = arith.addf %105, %104 : vector<8x128xf32>
    %107 = math.log %106 : vector<8x128xf32>
    %cst_55 = arith.constant 0.000000e+00 : f32
    %108 = vector.broadcast %cst_55 : f32 to vector<8x128xf32>
    %109 = arith.maximumf %100, %108 : vector<8x128xf32>
    %110 = arith.addf %109, %107 : vector<8x128xf32>
    %111 = arith.subf %110, %100 : vector<8x128xf32>
    %c4 = arith.constant 4 : index
    %c0_56 = arith.constant 0 : index
    %c0_57 = arith.constant 0 : index
    %112 = vector.load %arg8[%c4, %c0_56, %c0_57] : memref<8x8x128xf32, #tpu.memory_space<vmem>>, vector<1x8x128xf32>
    %113 = vector.shape_cast %112 : vector<1x8x128xf32> to vector<8x128xf32>
    %114 = arith.mulf %18, %111 : vector<8x128xf32>
    %115 = arith.addf %113, %114 : vector<8x128xf32>
    %c4_58 = arith.constant 4 : index
    %c0_59 = arith.constant 0 : index
    %c0_60 = arith.constant 0 : index
    %116 = vector.load %arg8[%c4_58, %c0_59, %c0_60] : memref<8x8x128xf32, #tpu.memory_space<vmem>>, vector<1x8x128xf32>
    %117 = vector.shape_cast %116 : vector<1x8x128xf32> to vector<8x128xf32>
    %118 = vector.shape_cast %115 : vector<8x128xf32> to vector<1x8x128xf32>
    tpu.vector_store %arg8[%c4_58, %c0_59, %c0_60], %118 {strides = array<i32>} : memref<8x8x128xf32, #tpu.memory_space<vmem>>, vector<1x8x128xf32>,
    %c7 = arith.constant 7 : index
    %c0_61 = arith.constant 0 : index
    %c0_62 = arith.constant 0 : index
    %119 = vector.load %arg8[%c7, %c0_61, %c0_62] : memref<8x8x128xf32, #tpu.memory_space<vmem>>, vector<1x8x128xf32>
    %120 = vector.shape_cast %119 : vector<1x8x128xf32> to vector<8x128xf32>
    %121 = arith.subf %15, %18 : vector<8x128xf32>
    %122 = arith.mulf %121, %110 : vector<8x128xf32>
    %123 = arith.addf %120, %122 : vector<8x128xf32>
    %c7_63 = arith.constant 7 : index
    %c0_64 = arith.constant 0 : index
    %c0_65 = arith.constant 0 : index
    %124 = vector.load %arg8[%c7_63, %c0_64, %c0_65] : memref<8x8x128xf32, #tpu.memory_space<vmem>>, vector<1x8x128xf32>
    %125 = vector.shape_cast %124 : vector<1x8x128xf32> to vector<8x128xf32>
    %126 = vector.shape_cast %123 : vector<8x128xf32> to vector<1x8x128xf32>
    tpu.vector_store %arg8[%c7_63, %c0_64, %c0_65], %126 {strides = array<i32>} : memref<8x8x128xf32, #tpu.memory_space<vmem>>, vector<1x8x128xf32>,
    %c0_i32_66 = arith.constant 0 : i32
    %127 = arith.cmpi eq, %arg1, %c0_i32_66 : i32
    %128 = arith.extui %127 : i1 to i32
    %c0_i32_67 = arith.constant 0 : i32
    %129 = arith.cmpi ne, %128, %c0_i32_67 : i32
    scf.if %129 {
      %c0_68 = arith.constant 0 : index
      %c0_69 = arith.constant 0 : index
      %c0_70 = arith.constant 0 : index
      %130 = vector.load %arg8[%c0_68, %c0_69, %c0_70] : memref<8x8x128xf32, #tpu.memory_space<vmem>>, vector<1x8x128xf32>
      %131 = vector.shape_cast %130 : vector<1x8x128xf32> to vector<8x128xf32>
      %132 = vector.shape_cast %131 : vector<8x128xf32> to vector<1x8x128xf32>
      %cst_71 = arith.constant dense<0.000000e+00> : vector<1xf32>
      %133 = vector.multi_reduction <add>, %132, %cst_71 [1, 2] : vector<1x8x128xf32> to vector<1xf32>
      %134 = vector.shape_cast %133 : vector<1xf32> to vector<1x1x1xf32>
      %135 = vector.extract %134[0, 0, 0] : f32 from vector<1x1x1xf32>
      %c0_72 = arith.constant 0 : index
      %c0_73 = arith.constant 0 : index
      %136 = memref.load %arg7[%c0_72, %c0_73] : memref<1x8xf32, #tpu.memory_space<smem>>
      memref.store %135, %arg7[%c0_72, %c0_73] : memref<1x8xf32, #tpu.memory_space<smem>>
      %c1_74 = arith.constant 1 : index
      %c0_75 = arith.constant 0 : index
      %c0_76 = arith.constant 0 : index
      %137 = vector.load %arg8[%c1_74, %c0_75, %c0_76] : memref<8x8x128xf32, #tpu.memory_space<vmem>>, vector<1x8x128xf32>
      %138 = vector.shape_cast %137 : vector<1x8x128xf32> to vector<8x128xf32>
      %139 = vector.shape_cast %138 : vector<8x128xf32> to vector<1x8x128xf32>
      %cst_77 = arith.constant dense<0.000000e+00> : vector<1xf32>
      %140 = vector.multi_reduction <add>, %139, %cst_77 [1, 2] : vector<1x8x128xf32> to vector<1xf32>
      %141 = vector.shape_cast %140 : vector<1xf32> to vector<1x1x1xf32>
      %142 = vector.extract %141[0, 0, 0] : f32 from vector<1x1x1xf32>
      %c0_78 = arith.constant 0 : index
      %c1_79 = arith.constant 1 : index
      %143 = memref.load %arg7[%c0_78, %c1_79] : memref<1x8xf32, #tpu.memory_space<smem>>
      memref.store %142, %arg7[%c0_78, %c1_79] : memref<1x8xf32, #tpu.memory_space<smem>>
      %c2_80 = arith.constant 2 : index
      %c0_81 = arith.constant 0 : index
      %c0_82 = arith.constant 0 : index
      %144 = vector.load %arg8[%c2_80, %c0_81, %c0_82] : memref<8x8x128xf32, #tpu.memory_space<vmem>>, vector<1x8x128xf32>
      %145 = vector.shape_cast %144 : vector<1x8x128xf32> to vector<8x128xf32>
      %146 = vector.shape_cast %145 : vector<8x128xf32> to vector<1x8x128xf32>
      %cst_83 = arith.constant dense<0.000000e+00> : vector<1xf32>
      %147 = vector.multi_reduction <add>, %146, %cst_83 [1, 2] : vector<1x8x128xf32> to vector<1xf32>
      %148 = vector.shape_cast %147 : vector<1xf32> to vector<1x1x1xf32>
      %149 = vector.extract %148[0, 0, 0] : f32 from vector<1x1x1xf32>
      %c0_84 = arith.constant 0 : index
      %c2_85 = arith.constant 2 : index
      %150 = memref.load %arg7[%c0_84, %c2_85] : memref<1x8xf32, #tpu.memory_space<smem>>
      memref.store %149, %arg7[%c0_84, %c2_85] : memref<1x8xf32, #tpu.memory_space<smem>>
      %c3_86 = arith.constant 3 : index
      %c0_87 = arith.constant 0 : index
      %c0_88 = arith.constant 0 : index
      %151 = vector.load %arg8[%c3_86, %c0_87, %c0_88] : memref<8x8x128xf32, #tpu.memory_space<vmem>>, vector<1x8x128xf32>
      %152 = vector.shape_cast %151 : vector<1x8x128xf32> to vector<8x128xf32>
      %153 = vector.shape_cast %152 : vector<8x128xf32> to vector<1x8x128xf32>
      %cst_89 = arith.constant dense<0.000000e+00> : vector<1xf32>
      %154 = vector.multi_reduction <add>, %153, %cst_89 [1, 2] : vector<1x8x128xf32> to vector<1xf32>
      %155 = vector.shape_cast %154 : vector<1xf32> to vector<1x1x1xf32>
      %156 = vector.extract %155[0, 0, 0] : f32 from vector<1x1x1xf32>
      %c0_90 = arith.constant 0 : index
      %c3_91 = arith.constant 3 : index
      %157 = memref.load %arg7[%c0_90, %c3_91] : memref<1x8xf32, #tpu.memory_space<smem>>
      memref.store %156, %arg7[%c0_90, %c3_91] : memref<1x8xf32, #tpu.memory_space<smem>>
      %c4_92 = arith.constant 4 : index
      %c0_93 = arith.constant 0 : index
      %c0_94 = arith.constant 0 : index
      %158 = vector.load %arg8[%c4_92, %c0_93, %c0_94] : memref<8x8x128xf32, #tpu.memory_space<vmem>>, vector<1x8x128xf32>
      %159 = vector.shape_cast %158 : vector<1x8x128xf32> to vector<8x128xf32>
      %160 = vector.shape_cast %159 : vector<8x128xf32> to vector<1x8x128xf32>
      %cst_95 = arith.constant dense<0.000000e+00> : vector<1xf32>
      %161 = vector.multi_reduction <add>, %160, %cst_95 [1, 2] : vector<1x8x128xf32> to vector<1xf32>
      %162 = vector.shape_cast %161 : vector<1xf32> to vector<1x1x1xf32>
      %163 = vector.extract %162[0, 0, 0] : f32 from vector<1x1x1xf32>
      %c0_96 = arith.constant 0 : index
      %c4_97 = arith.constant 4 : index
      %164 = memref.load %arg7[%c0_96, %c4_97] : memref<1x8xf32, #tpu.memory_space<smem>>
      memref.store %163, %arg7[%c0_96, %c4_97] : memref<1x8xf32, #tpu.memory_space<smem>>
      %c5_98 = arith.constant 5 : index
      %c0_99 = arith.constant 0 : index
      %c0_100 = arith.constant 0 : index
      %165 = vector.load %arg8[%c5_98, %c0_99, %c0_100] : memref<8x8x128xf32, #tpu.memory_space<vmem>>, vector<1x8x128xf32>
      %166 = vector.shape_cast %165 : vector<1x8x128xf32> to vector<8x128xf32>
      %167 = vector.shape_cast %166 : vector<8x128xf32> to vector<1x8x128xf32>
      %cst_101 = arith.constant dense<0.000000e+00> : vector<1xf32>
      %168 = vector.multi_reduction <add>, %167, %cst_101 [1, 2] : vector<1x8x128xf32> to vector<1xf32>
      %169 = vector.shape_cast %168 : vector<1xf32> to vector<1x1x1xf32>
      %170 = vector.extract %169[0, 0, 0] : f32 from vector<1x1x1xf32>
      %c0_102 = arith.constant 0 : index
      %c5_103 = arith.constant 5 : index
      %171 = memref.load %arg7[%c0_102, %c5_103] : memref<1x8xf32, #tpu.memory_space<smem>>
      memref.store %170, %arg7[%c0_102, %c5_103] : memref<1x8xf32, #tpu.memory_space<smem>>
      %c6_104 = arith.constant 6 : index
      %c0_105 = arith.constant 0 : index
      %c0_106 = arith.constant 0 : index
      %172 = vector.load %arg8[%c6_104, %c0_105, %c0_106] : memref<8x8x128xf32, #tpu.memory_space<vmem>>, vector<1x8x128xf32>
      %173 = vector.shape_cast %172 : vector<1x8x128xf32> to vector<8x128xf32>
      %174 = vector.shape_cast %173 : vector<8x128xf32> to vector<1x8x128xf32>
      %cst_107 = arith.constant dense<0.000000e+00> : vector<1xf32>
      %175 = vector.multi_reduction <add>, %174, %cst_107 [1, 2] : vector<1x8x128xf32> to vector<1xf32>
      %176 = vector.shape_cast %175 : vector<1xf32> to vector<1x1x1xf32>
      %177 = vector.extract %176[0, 0, 0] : f32 from vector<1x1x1xf32>
      %c0_108 = arith.constant 0 : index
      %c6_109 = arith.constant 6 : index
      %178 = memref.load %arg7[%c0_108, %c6_109] : memref<1x8xf32, #tpu.memory_space<smem>>
      memref.store %177, %arg7[%c0_108, %c6_109] : memref<1x8xf32, #tpu.memory_space<smem>>
      %c7_110 = arith.constant 7 : index
      %c0_111 = arith.constant 0 : index
      %c0_112 = arith.constant 0 : index
      %179 = vector.load %arg8[%c7_110, %c0_111, %c0_112] : memref<8x8x128xf32, #tpu.memory_space<vmem>>, vector<1x8x128xf32>
      %180 = vector.shape_cast %179 : vector<1x8x128xf32> to vector<8x128xf32>
      %181 = vector.shape_cast %180 : vector<8x128xf32> to vector<1x8x128xf32>
      %cst_113 = arith.constant dense<0.000000e+00> : vector<1xf32>
      %182 = vector.multi_reduction <add>, %181, %cst_113 [1, 2] : vector<1x8x128xf32> to vector<1xf32>
      %183 = vector.shape_cast %182 : vector<1xf32> to vector<1x1x1xf32>
      %184 = vector.extract %183[0, 0, 0] : f32 from vector<1x1x1xf32>
      %c0_114 = arith.constant 0 : index
      %c7_115 = arith.constant 7 : index
      %185 = memref.load %arg7[%c0_114, %c7_115] : memref<1x8xf32, #tpu.memory_space<smem>>
      memref.store %184, %arg7[%c0_114, %c7_115] : memref<1x8xf32, #tpu.memory_space<smem>>
    } else {
    }
    return
  }
  func.func @transform_0(%arg0: i32, %arg1: i32) -> (i32, i32) {
    %c1_i32 = arith.constant 1 : i32
    %0 = arith.muli %arg0, %c1_i32 : i32
    %1 = arith.addi %0, %arg1 : i32
    %c0_i32 = arith.constant 0 : i32
    %c0_i32_0 = arith.constant 0 : i32
    return %1, %c0_i32 : i32, i32
  }
  func.func @transform_1(%arg0: i32, %arg1: i32) -> (i32, i32) {
    %c1_i32 = arith.constant 1 : i32
    %0 = arith.muli %arg0, %c1_i32 : i32
    %1 = arith.addi %0, %arg1 : i32
    %c0_i32 = arith.constant 0 : i32
    %c0_i32_0 = arith.constant 0 : i32
    return %1, %c0_i32 : i32, i32
  }
  func.func @transform_2(%arg0: i32, %arg1: i32) -> (i32, i32) {
    %c1_i32 = arith.constant 1 : i32
    %0 = arith.muli %arg0, %c1_i32 : i32
    %1 = arith.addi %0, %arg1 : i32
    %c0_i32 = arith.constant 0 : i32
    %c0_i32_0 = arith.constant 0 : i32
    return %1, %c0_i32 : i32, i32
  }
  func.func @transform_3(%arg0: i32, %arg1: i32) -> (i32, i32) {
    %c1_i32 = arith.constant 1 : i32
    %0 = arith.muli %arg0, %c1_i32 : i32
    %1 = arith.addi %0, %arg1 : i32
    %c0_i32 = arith.constant 0 : i32
    %c0_i32_0 = arith.constant 0 : i32
    return %1, %c0_i32 : i32, i32
  }
  func.func @transform_4(%arg0: i32, %arg1: i32) -> (i32, i32) {
    %c1_i32 = arith.constant 1 : i32
    %0 = arith.muli %arg0, %c1_i32 : i32
    %1 = arith.addi %0, %arg1 : i32
    %c0_i32 = arith.constant 0 : i32
    %c0_i32_0 = arith.constant 0 : i32
    return %1, %c0_i32 : i32, i32
  }
  func.func @transform_5(%arg0: i32, %arg1: i32) -> (i32, i32) {
    %c0_i32 = arith.constant 0 : i32
    %c0_i32_0 = arith.constant 0 : i32
    return %arg0, %c0_i32 : i32, i32
  }
}

</mosaic_0001>

<bundles_post_ra>
// kernel: mask_loss_ce_all_binary.1
= control target key start
LH: loop header
LB: loop body
LE: loop exit
PB: predicated region body
PF: predicated region fallthrough
CT: control target
= control target key end

     0   :  { %v195_v0 = vlaneseq  ;;  %s526_s0 = inlined_call_operand.vmem [shape: f32[4,128], index: 0, kind: input, shape index: {}]   ;;  %s527_s1 = inlined_call_operand.vmem [shape: f32[4,128], index: 1, kind: input, shape index: {}]   ;;  %s528_s2 = inlined_call_operand.vmem [shape: f32[4,128], index: 2, kind: input, shape index: {}]   ;;  %s529_s3 = inlined_call_operand.vmem [shape: f32[4,128], index: 3, kind: input, shape index: {}]   ;;  %s530_s4 = inlined_call_operand.vmem [shape: f32[4,128], index: 4, kind: input, shape index: {}]   ;;  %s531_s5 = inlined_call_operand.vmem [shape: f32[1,8], index: 5, kind: output, shape index: {}]  }
   0x1   :  { %v199_v1 = vld [vmem:[%s526_s0] sm:$0xff] }
   0x2   :  { %v214_v2 = vld [vmem:[%s528_s2] sm:$0xff] }
   0x3   :  { %v263_v3 = vld [vmem:[%s530_s4] sm:$0xff] }
   0x4   :  { %10 = vsyncpa [#allocation4], 0  ;;  %v196_v4 = vshrl.u32 %v195_v0, 7  ;;  %vm201_vm0 = vcmp.eq.f32.partialorder %v199_v1, %v199_v1  ;;  %v239_v5 = vld [vmem:[%s529_s3] sm:$0xff]  ;;  %vm215_vm1 = vcmp.ne.f32.partialorder %v214_v2, 0.0  ;;  %vm264_vm3 = vcmp.ne.f32.partialorder %v263_v3, 0.0 }
   0x5   :  { %vm240_vm5 = vcmp.ne.f32.partialorder %v239_v5, 0.0  ;;  %v476_v6 = vmov 0.0   ;;  %v205_v8 = vld [vmem:[%s527_s1] sm:$0xff]  ;;  %s392_s28 = sshll.u32 %s531_s5, 4  ;;  %s393_s28 = int_to_ptr.vmem [resolvable:$true] %s392_s28 }
   0x6   :  { %vm200_vm2 = vcmp.lt.s32.totalorder %v196_v4, 4  ;;  %s462_s9 = scalar_lea.vmem %s393_s28, 16  ;;  %p467_p1 = scmp.lt.s32.totalorder %s393_s28, %s393_s28 }
   0x7   :  { %vm202_vm4 = vmand %vm200_vm2, %vm201_vm0  ;;  %p463_p0 = scmp.ne.s32.totalorder %s393_s28, %s462_s9  ;;  %p468_p2 = scmp.lt.s32.totalorder %s462_s9, %s462_s9 }
   0x8   :  { %v431_v7 = vsel %vm202_vm4, 1.0, %v476_v6  ;;  %vm216_vm6 = vmand %vm202_vm4, %vm215_vm1  ;;  %v206_v14 = vsel %vm202_vm4, %v205_v8, 0.0 }
   0x9   :  { %291 = vadd.xlane.f32.xlu0 %v431_v7  ;;  %v217_v9 = vsel %vm216_vm6, %v214_v2, -1.0  ;;  %vm265_vm7 = vmand %vm202_vm4, %vm264_vm3  ;;  %v235_v32 = vsub.f32 %v431_v7, %v206_v14  ;;  %p469_p3 = por %p468_p2, %p467_p1 }
   0xa   :  { %v218_v10 = vand.u32 2147483647, %v217_v9  ;;  %v266_v11 = vsel %vm265_vm7, %v263_v3, -1.0  ;;  %vm241_vm8 = vmand %vm202_vm4, %vm240_vm5  ;;  %v225_v28 = vmax.f32 %v217_v9, 0.0 }
   0xb   :  { %v267_v12 = vand.u32 2147483647, %v266_v11  ;;  %v242_v13 = vsel %vm241_vm8, %v239_v5, -1.0  ;;  %v274_v30 = vmax.f32 %v266_v11, 0.0  ;;  %p470_p4 = pnand %p469_p3, %p463_p0 }
   0xc   :  { %v219_v15 = vsub.f32 0.0, %v218_v10  ;;  %v243_v16 = vand.u32 2147483647, %v242_v13  ;;  %v250_v34 = vmax.f32 %v242_v13, 0.0 }
   0xd   :  { %303 = vadd.xlane.f32.xlu0 %v206_v14  ;;  %v268_v17 = vsub.f32 0.0, %v267_v12 }
   0xe   :  { %v220_v18 = vmul.f32 1.442695, %v219_v15  ;;  %v244_v19 = vsub.f32 0.0, %v243_v16 }
   0xf   :  { %v269_v20 = vmul.f32 1.442695, %v268_v17 }
  0x10   :  { %450 = vpow2.f32 %v220_v18  ;;  %v245_v21 = vmul.f32 1.442695, %v244_v19 }
  0x11   :  { %452 = vpow2.f32 %v269_v20 }
  0x12   :  { %454 = vpow2.f32 %v245_v21 }
  0x1a   :  { %v451_v22 = vpop.eup %450 }
  0x1b   :  { %v453_v23 = vpop.eup %452  ;;  %v222_v24 = vadd.f32 1.0, %v451_v22 }
  0x1c   :  { %v455_v25 = vpop.eup %454  ;;  %v271_v26 = vadd.f32 1.0, %v453_v23 }
  0x1d   :  { %456 = vlog2.f32 %v222_v24  ;;  %v247_v27 = vadd.f32 1.0, %v455_v25 }
  0x1e   :  { %458 = vlog2.f32 %v271_v26 }
  0x1f   :  { %460 = vlog2.f32 %v247_v27 }
  0x27   :  { %v457_v29 = vpop.eup %456 }
  0x28   :  { %v459_v31 = vpop.eup %458  ;;  %v224_v33 = vmul.f32 0.6931472, %v457_v29 }
  0x29   :  { %v461_v35 = vpop.eup %460  ;;  %v273_v36 = vmul.f32 0.6931472, %v459_v31 }
  0x2a   :  { %v226_v37 = vadd.f32 %v225_v28, %v224_v33  ;;  %v249_v38 = vmul.f32 0.6931472, %v461_v35 }
  0x2b   :  { %v275_v39 = vadd.f32 %v274_v30, %v273_v36 }
  0x2c   :  { %v236_v40 = vmul.f32 %v235_v32, %v226_v37  ;;  %v227_v41 = vsub.f32 %v226_v37, %v217_v9  ;;  %v251_v42 = vadd.f32 %v250_v34, %v249_v38 }
  0x2d   :  { %v276_v43 = vsub.f32 %v275_v39, %v266_v11  ;;  %v284_v49 = vmul.f32 %v275_v39, %v235_v32 }
  0x2e   :  { %351 = vadd.xlane.f32.xlu1 %v236_v40  ;;  %v230_v44 = vmul.f32 %v227_v41, %v206_v14  ;;  %v252_v45 = vsub.f32 %v251_v42, %v242_v13  ;;  %v260_v47 = vmul.f32 %v251_v42, %v235_v32 }
  0x2f   :  { %v279_v46 = vmul.f32 %v276_v43, %v206_v14 }
  0x30   :  { %v255_v48 = vmul.f32 %v252_v45, %v206_v14 }
  0x31   :  { %339 = vadd.xlane.f32.xlu0 %v279_v46 }
  0x32   :  { %315 = vadd.xlane.f32.xlu1 %v230_v44 }
  0x35   :  { %363 = vadd.xlane.f32.xlu0 %v260_v47 }
  0x36   :  { %327 = vadd.xlane.f32.xlu1 %v255_v48 }
  0x3a   :  { %375 = vadd.xlane.f32.xlu1 %v284_v49 }
  0x96   :  { %v292_v50 = vpop.xlane.xlu0 %291 }
  0x97   :  { %v293_v51 = vrot.slane %v292_v50, 4 }
  0x99   :  { %v294_v52 = vadd.f32 %v293_v51, %v292_v50 }
  0x9a   :  { %v304_v53 = vpop.xlane.xlu0 %303 }
  0x9b   :  { %v295_v54 = vrot.slane %v294_v52, 2  ;;  %v305_v55 = vrot.slane %v304_v53, 4 }
  0x9d   :  { %v306_v56 = vadd.f32 %v305_v55, %v304_v53  ;;  %v296_v57 = vadd.f32 %v295_v54, %v294_v52 }
  0x9f   :  { %v307_v58 = vrot.slane %v306_v56, 2  ;;  %v297_v59 = vrot.slane %v296_v57, 1 }
  0xa1   :  { %v298_v60 = vadd.f32 %v297_v59, %v296_v57  ;;  %v308_v61 = vadd.f32 %v307_v58, %v306_v56 }
  0xa3   :  { %432 = vpush %v298_v60  ;;  %v309_v62 = vrot.slane %v308_v61, 1 }
  0xa5   :  { %v310_v63 = vadd.f32 %v309_v62, %v308_v61 }
  0xa7   :  { %434 = vpush %v310_v63 }
  0xbb   :  { %v352_v0 = vpop.xlane.xlu1 %351 }
  0xbc   :  { %v353_v1 = vrot.slane %v352_v0, 4 }
  0xbe   :  { %v340_v2 = vpop.xlane.xlu0 %339  ;;  %v354_v5 = vadd.f32 %v353_v1, %v352_v0 }
  0xbf   :  { %v341_v3 = vrot.slane %v340_v2, 4  ;;  %v316_v4 = vpop.xlane.xlu1 %315 }
  0xc0   :  { %v317_v6 = vrot.slane %v316_v4, 4  ;;  %v355_v13 = vrot.slane %v354_v5, 2 }
  0xc1   :  { %v342_v7 = vadd.f32 %v341_v3, %v340_v2 }
  0xc2   :  { %v318_v8 = vadd.f32 %v317_v6, %v316_v4  ;;  %v364_v9 = vpop.xlane.xlu0 %363  ;;  %v356_v25 = vadd.f32 %v355_v13, %v354_v5 }
  0xc3   :  { %v343_v10 = vrot.slane %v342_v7, 2  ;;  %v365_v11 = vrot.slane %v364_v9, 4  ;;  %v328_v12 = vpop.xlane.xlu1 %327 }
  0xc4   :  { %v319_v14 = vrot.slane %v318_v8, 2  ;;  %v329_v15 = vrot.slane %v328_v12, 4  ;;  %v357_v33 = vrot.slane %v356_v25, 1 }
  0xc5   :  { %v366_v16 = vadd.f32 %v365_v11, %v364_v9  ;;  %v344_v21 = vadd.f32 %v343_v10, %v342_v7 }
  0xc6   :  { %v330_v17 = vadd.f32 %v329_v15, %v328_v12  ;;  %v320_v18 = vadd.f32 %v319_v14, %v318_v8  ;;  %v358_v38 = vadd.f32 %v357_v33, %v356_v25 }
  0xc7   :  { %v367_v19 = vrot.slane %v366_v16, 2  ;;  %v376_v20 = vpop.xlane.xlu1 %375  ;;  %v345_v30 = vrot.slane %v344_v21, 1 }
  0xc8   :  { %v331_v22 = vrot.slane %v330_v17, 2  ;;  %v377_v23 = vrot.slane %v376_v20, 4  ;;  %v321_v24 = vrot.slane %v320_v18, 1 }
  0xc9   :  { %v368_v26 = vadd.f32 %v367_v19, %v366_v16  ;;  %v346_v37 = vadd.f32 %v345_v30, %v344_v21 }
  0xca   :  { %v378_v27 = vadd.f32 %v377_v23, %v376_v20  ;;  %v322_v28 = vadd.f32 %v321_v24, %v320_v18  ;;  %v332_v29 = vadd.f32 %v331_v22, %v330_v17 }
  0xcb   :  { %v369_v34 = vrot.slane %v368_v26, 1 }
  0xcc   :  { %v379_v31 = vrot.slane %v378_v27, 2  ;;  %436 = vpush %v322_v28  ;;  %v333_v32 = vrot.slane %v332_v29, 1 }
  0xcd   :  { %v370_v40 = vadd.f32 %v369_v34, %v368_v26 }
  0xce   :  { %v380_v35 = vadd.f32 %v379_v31, %v378_v27  ;;  %v334_v36 = vadd.f32 %v333_v32, %v332_v29 }
  0xd0   :  { %438 = vpush %v334_v36  ;;  %v381_v39 = vrot.slane %v380_v35, 1 }
  0xd1   :  { %440 = vpush %v346_v37 }
  0xd2   :  { %442 = vpush %v358_v38  ;;  %v382_v41 = vadd.f32 %v381_v39, %v380_v35 }
  0xd3   :  { %444 = vpush %v370_v40 }
  0xd4   :  { %446 = vpush %v382_v41  ;;  %s433_s1 = spop %432 }
  0xd5   :  { %301 = sst [smem:[#allocation3]] %s433_s1 }
  0xd8   :  { %s435_s3 = spop %434 }
  0xd9   :  { %313 = sst [smem:[#allocation3 + $0x1]] %s435_s3 }
  0xfd   :  { %s437_s4 = spop %436 }
  0xfe   :  { %325 = sst [smem:[#allocation3 + $0x2]] %s437_s4 }
 0x101   :  { %s439_s29 = spop %438 }
 0x102   :  { %337 = sst [smem:[#allocation3 + $0x3]] %s439_s29  ;;  %s441_s30 = spop %440 }
 0x103   :  { %349 = sst [smem:[#allocation3 + $0x4]] %s441_s30  ;;  %s443_s6 = spop %442 }
 0x104   :  { %361 = sst [smem:[#allocation3 + $0x5]] %s443_s6  ;;  %s445_s7 = spop %444 }
 0x105   :  { %373 = sst [smem:[#allocation3 + $0x6]] %s445_s7  ;;  %s447_s8 = spop %446 }
 0x106   :  { %385 = sst [smem:[#allocation3 + $0x7]] %s447_s8 }
 0x107   :  { %473 = shalt.err (!%p470_p4)
}
 0x108   :  { %s477_s10 = smov [#allocation3]  }
 0x109   :  { %395 = dma.smem_to_vmem %s477_s10, 16, %s393_s28, [#allocation4]  }
 0x10a   :  { %474 = dma.done.wait [#allocation4], 16  }
 0x10b   :  { %475 = vsyncadd [#allocation4], 4294967280 }
 0x10c   :  { %399 = sfence }
 0x10d   :  { %400 = vsyncpa [#allocation4], 1 }

</bundles_post_ra>
